<compile_context>
chip_gen: v7x
topology: tpu7x:2x2x1
jax: 0.10.0
libtpu: 0.0.40
codegen_flags: <defaults>
</compile_context>

<pallas_src>
import numpy as np
import jax
import jax.numpy as jnp
from jax import lax
from jax.experimental import pallas as pl
from jax.experimental.pallas import tpu as pltpu

LANES = 128


def _round_up(x, m):
    return -(-x // m) * m


def _sublanes(dtype):
    """Native sublane tile: 8 for 32-bit, 16 for 16-bit, 32 for 8-bit dtypes."""
    return max(8, 32 // jnp.dtype(dtype).itemsize)


def _vmem_limit_bytes():
    """Scoped-VMEM limit for these kernels, derived from the chip's capacity."""
    cap = 64 << 20
    try:
        cap = int(getattr(pltpu.get_tpu_info(), "vmem_capacity_bytes", cap))
    except Exception:
        pass
    # v5e/v6e (128 MiB physical) -> 48 MiB scoped; v7x (64 MiB) -> 32 MiB scoped.
    return int(min(48 << 20, max(cap // 2, 16 << 20)))


def _choose_l_block(L, per_lane_bytes, budget_bytes):
    """Largest lane-block within the VMEM budget: full L, a 128-multiple divisor
    of L (no ragged tail), or a ragged 128-multiple tile (masked in-kernel)."""
    max_l = max(budget_bytes // max(per_lane_bytes, 1), LANES)
    if L <= max_l:
        return int(L)
    max_l = (max_l // LANES) * LANES
    for cand in range(max_l, 0, -LANES):
        if L % cand == 0:
            return cand
    return max_l  # ragged tail; reduce kernels mask it, 'none' writes are clipped


# --------------------------- elementwise ('none') kernels ---------------------------

def _make_none_kernel(weighted, loss_weight):
    lw = float(loss_weight)

    def _finish(sq, o_ref):
        if lw != 1.0:
            sq = sq * lw                      # loss_weight fused in-kernel
        o_ref[...] = sq.astype(o_ref.dtype)

    if not weighted:
        def kernel(p_ref, t_ref, o_ref):
            d = p_ref[...] - t_ref[...]
            _finish(d * d, o_ref)
        return kernel

    def kernel(p_ref, t_ref, w_ref, o_ref):
        d = p_ref[...] - t_ref[...]
        w = w_ref[...].astype(d.dtype)        # (1, 1 or C, l_block): broadcasts over C
        _finish(d * d * w, o_ref)
    return kernel


# --------------------------- reduction kernels ---------------------------

def _make_reduce_kernel(*, C, L, l_block, weighted, cw, reduction, loss_weight, numel):
    ragged = (L % l_block) != 0
    need_wsum = weighted and reduction == "mean"
    scale = float(loss_weight)
    if reduction == "mean" and not weighted:
        scale = scale / float(numel)          # static numel for the unweighted mean
    chan_mult = float(C) if (weighted and cw == 1 and C > 1) else 1.0

    def _lane_mask():
        lane = lax.broadcasted_iota(jnp.int32, (1, 1, l_block), 2)
        return (pl.program_id(1) * l_block + lane) < L

    def _is_first():
        return jnp.logical_and(pl.program_id(0) == 0, pl.program_id(1) == 0)

    def _is_last():
        return jnp.logical_and(pl.program_id(0) == pl.num_programs(0) - 1,
                               pl.program_id(1) == pl.num_programs(1) - 1)

    def _epilogue(o_ref, sq_acc, w_acc):
        s = jnp.sum(sq_acc[...]) * scale
        if need_wsum:
            s = s / (jnp.sum(w_acc[...]) * chan_mult)
        o_ref[0, 0] = s                        # fused scalar finalization -> SMEM

    if not weighted:
        def kernel(p_ref, t_ref, o_ref, sq_acc):
            @pl.when(_is_first())
            def _():
                sq_acc[...] = jnp.zeros_like(sq_acc)

            d = (p_ref[...] - t_ref[...]).astype(jnp.float32)
            sq = d * d
            if ragged:
                sq = jnp.where(_lane_mask(), sq, 0.0)
            sq_acc[...] += jnp.sum(sq, axis=1)

            @pl.when(_is_last())
            def _():
                _epilogue(o_ref, sq_acc, None)
        return kernel

    def kernel(p_ref, t_ref, w_ref, o_ref, sq_acc, w_acc):
        @pl.when(_is_first())
        def _():
            sq_acc[...] = jnp.zeros_like(sq_acc)
            if need_wsum:
                w_acc[...] = jnp.zeros_like(w_acc)

        d = (p_ref[...] - t_ref[...]).astype(jnp.float32)
        w = w_ref[...].astype(jnp.float32)     # (1, 1 or C, l_block)
        sq = d * d * w                         # broadcasts over C for 1-channel weight
        if ragged:
            mask = _lane_mask()
            sq = jnp.where(mask, sq, 0.0)
        sq_acc[...] += jnp.sum(sq, axis=1)
        if need_wsum:
            if ragged:
                w = jnp.where(mask, w, 0.0)
            w_acc[...] += jnp.sum(w, axis=1)

        @pl.when(_is_last())
        def _():
            _epilogue(o_ref, sq_acc, w_acc)
    return kernel


# --------------------------- module wrapper ---------------------------

class MSELoss:
    """Pallas-TPU implementation of HINet's MSELoss (weighted L2 loss)."""

    def __init__(self, loss_weight=1.0, reduction="mean"):
        if reduction not in ("none", "mean", "sum"):
            raise ValueError(f"Unsupported reduction mode: {reduction}. "
                             f"Supported ones are: ['none', 'mean', 'sum']")
        self.loss_weight = float(loss_weight)
        self.reduction = reduction

    def __call__(self, pred, target, weight=None, **kwargs):
        assert pred.shape == target.shape, "pred/target shape mismatch"

        # Free (metadata-only) view: (N, C, L) with L = prod(trailing dims).
        if pred.ndim >= 3:
            N, C = int(pred.shape[0]), int(pred.shape[1])
            L = int(np.prod(pred.shape[2:]))
        else:
            N, C, L = 1, 1, int(pred.size)
        pred3 = pred.reshape(N, C, L)
        target3 = target.reshape(N, C, L)

        weighted = weight is not None
        if weighted:
            if pred.ndim >= 3:
                assert weight.ndim == pred.ndim and weight.shape[0] == pred.shape[0]
                assert weight.shape[1] in (1, pred.shape[1]), \
                    "weight channel dim must be 1 or C"
                assert weight.shape[2:] == pred.shape[2:]
                Cw = int(weight.shape[1])
            else:
                assert weight.shape == pred.shape
                Cw = C
            weight3 = weight.reshape(N, Cw, L)   # 1-channel weight stays 1-channel in HBM
        else:
            Cw, weight3 = 0, None

        itemsize = jnp.dtype(pred.dtype).itemsize
        c_pad = _round_up(C, _sublanes(pred.dtype))           # VMEM sublane padding of C
        if weighted:
            w_isz = jnp.dtype(weight3.dtype).itemsize
            cw_pad = _round_up(Cw, _sublanes(weight3.dtype))
        vmem_limit = _vmem_limit_bytes()
        buf_budget = (3 * vmem_limit) // 5      # leave headroom for intermediates/spills

        if self.reduction == "none":
            # Streams: pred, target, out (+ weight), each double-buffered by Pallas.
            per_lane = 3 * 2 * c_pad * itemsize
            if weighted:
                per_lane += 2 * cw_pad * w_isz
            l_block = _choose_l_block(L, per_lane, buf_budget)
            grid = (N, pl.cdiv(L, l_block))
            data_spec = pl.BlockSpec((1, C, l_block), lambda n, l: (n, 0, l))
            in_specs, args = [data_spec, data_spec], [pred3, target3]
            if weighted:
                in_specs.append(pl.BlockSpec((1, Cw, l_block), lambda n, l: (n, 0, l)))
                args.append(weight3)
            out = pl.pallas_call(
                _make_none_kernel(weighted, self.loss_weight),
                out_shape=jax.ShapeDtypeStruct((N, C, L), pred.dtype),
                grid=grid,
                in_specs=in_specs,
                out_specs=data_spec,
                compiler_params=pltpu.CompilerParams(
                    dimension_semantics=("parallel", "parallel"),
                    vmem_limit_bytes=vmem_limit),
            )(*args)
            return out.reshape(pred.shape)       # free reshape, no slice/copy

        # reduction in {'mean', 'sum'}: fully fused scalar output (f32).
        per_lane = 2 * 2 * c_pad * itemsize + 8 * 4           # pred/target bufs + sq acc
        if weighted:
            per_lane += 2 * cw_pad * w_isz + 8 * 4            # weight bufs + w acc
        l_block = _choose_l_block(L, per_lane, buf_budget)
        grid = (N, pl.cdiv(L, l_block))
        data_spec = pl.BlockSpec((1, C, l_block), lambda n, l: (n, 0, l))
        in_specs, args = [data_spec, data_spec], [pred3, target3]
        scratch = [pltpu.VMEM((1, l_block), jnp.float32)]
        if weighted:
            in_specs.append(pl.BlockSpec((1, Cw, l_block), lambda n, l: (n, 0, l)))
            args.append(weight3)
            scratch.append(pltpu.VMEM((1, l_block), jnp.float32))
        kernel = _make_reduce_kernel(
            C=C, L=L, l_block=l_block, weighted=weighted, cw=Cw,
            reduction=self.reduction, loss_weight=self.loss_weight,
            numel=int(pred.size))
        out = pl.pallas_call(
            kernel,
            out_shape=jax.ShapeDtypeStruct((1, 1), jnp.float32),
            grid=grid,
            in_specs=in_specs,
            out_specs=pl.BlockSpec(memory_space=pltpu.MemorySpace.SMEM),
            scratch_shapes=scratch,
            compiler_params=pltpu.CompilerParams(
                dimension_semantics=("arbitrary", "arbitrary"),
                vmem_limit_bytes=vmem_limit),
        )(*args)
        return out[0, 0]                         # f32 accumulation result


if __name__ == "__main__":
    key = jax.random.PRNGKey(0)
    k1, k2, k3, k4 = jax.random.split(key, 4)
    shape = (2, 4, 16, 16)                       # (N, C, H, W)
    pred = jax.random.normal(k1, shape, dtype=jnp.float32)
    target = jax.random.normal(k2, shape, dtype=jnp.float32)
    weight = jax.random.uniform(k3, shape, dtype=jnp.float32)
    weight1 = jax.random.uniform(k4, (2, 1, 16, 16), dtype=jnp.float32)  # 1-channel

    # mean (default), no weight
    loss_mean = MSELoss(1.0, "mean")(pred, target)
    jax.block_until_ready(loss_mean)
    assert jnp.allclose(loss_mean, jnp.mean((pred - target) ** 2), rtol=1e-5, atol=1e-6)

    # sum, full weight
    loss_sum = MSELoss(0.5, "sum")(pred, target, weight)
    jax.block_until_ready(loss_sum)
    assert jnp.allclose(loss_sum, 0.5 * jnp.sum((pred - target) ** 2 * weight),
                        rtol=1e-5, atol=1e-5)

    # mean, full weight (BasicSR: divide by weight.sum())
    loss_wmean = MSELoss(2.0, "mean")(pred, target, weight)
    jax.block_until_ready(loss_wmean)
    ref_wmean = 2.0 * jnp.sum((pred - target) ** 2 * weight) / jnp.sum(weight)
    assert jnp.allclose(loss_wmean, ref_wmean, rtol=1e-5, atol=1e-6)

    # mean, 1-channel weight (denominator = weight.sum() * C), no HBM broadcast
    loss_wmean1 = MSELoss(1.0, "mean")(pred, target, weight1)
    jax.block_until_ready(loss_wmean1)
    ref_wmean1 = jnp.sum((pred - target) ** 2 * weight1) / (jnp.sum(weight1) * shape[1])
    assert jnp.allclose(loss_wmean1, ref_wmean1, rtol=1e-5, atol=1e-6)

    # none, full weight, loss_weight fused in kernel
    loss_none = MSELoss(3.0, "none")(pred, target, weight)
    jax.block_until_ready(loss_none)
    assert loss_none.shape == shape
    assert jnp.allclose(loss_none, 3.0 * (pred - target) ** 2 * weight,
                        rtol=1e-5, atol=1e-6)

    # none, 1-channel weight (broadcast inside the kernel)
    loss_none1 = MSELoss(1.0, "none")(pred, target, weight1)
    jax.block_until_ready(loss_none1)
    assert jnp.allclose(loss_none1, (pred - target) ** 2 * weight1, rtol=1e-5, atol=1e-6)

    # none, no weight
    loss_none_nw = MSELoss(1.0, "none")(pred, target)
    jax.block_until_ready(loss_none_nw)
    assert jnp.allclose(loss_none_nw, (pred - target) ** 2, rtol=1e-5, atol=1e-6)

    print("KERNEL_OK")
</pallas_src>

<mosaic_0001>
module attributes {stable_mosaic.version = 11 : i64} {
  func.func @kernel(%arg0: i32, %arg1: i32, %arg2: memref<1x4x256xf32, #tpu.memory_space<vmem>>, %arg3: memref<1x4x256xf32, #tpu.memory_space<vmem>>, %arg4: memref<1x1xf32, #tpu.memory_space<smem>>, %arg5: memref<1x256xf32, #tpu.memory_space<vmem>>) attributes {dimension_semantics = [#tpu.dimension_semantics<arbitrary>, #tpu.dimension_semantics<arbitrary>], iteration_bounds = array<i64: 2, 1>, scalar_prefetch = 0 : i64, scratch_operands = 1 : i64, tpu.core_type = #tpu.core_type<tc>, window_params = [{transform_indices = @transform_0, window_bounds = array<i64: 1, 4, 256>}, {transform_indices = @transform_1, window_bounds = array<i64: 1, 4, 256>}, {transform_indices = @transform_2, window_bounds = array<i64: 1, 1>}]} {
    %c0_i32 = arith.constant 0 : i32
    %0 = arith.cmpi eq, %arg0, %c0_i32 : i32
    %c0_i32_0 = arith.constant 0 : i32
    %1 = arith.cmpi eq, %arg1, %c0_i32_0 : i32
    %2 = arith.andi %0, %1 : i1
    %3 = arith.extui %2 : i1 to i32
    %c0_i32_1 = arith.constant 0 : i32
    %4 = arith.cmpi ne, %3, %c0_i32_1 : i32
    scf.if %4 {
      %cst_13 = arith.constant 0.000000e+00 : f32
      %18 = vector.broadcast %cst_13 : f32 to vector<1x256xf32>
      %c0_14 = arith.constant 0 : index
      %c0_15 = arith.constant 0 : index
      %19 = vector.load %arg5[%c0_14, %c0_15] : memref<1x256xf32, #tpu.memory_space<vmem>>, vector<1x256xf32>
      tpu.vector_store %arg5[%c0_14, %c0_15], %18 {strides = array<i32>} : memref<1x256xf32, #tpu.memory_space<vmem>>, vector<1x256xf32>,
    } else {
    }
    %c0 = arith.constant 0 : index
    %c0_2 = arith.constant 0 : index
    %c0_3 = arith.constant 0 : index
    %5 = vector.load %arg2[%c0, %c0_2, %c0_3] : memref<1x4x256xf32, #tpu.memory_space<vmem>>, vector<1x4x256xf32>
    %c0_4 = arith.constant 0 : index
    %c0_5 = arith.constant 0 : index
    %c0_6 = arith.constant 0 : index
    %6 = vector.load %arg3[%c0_4, %c0_5, %c0_6] : memref<1x4x256xf32, #tpu.memory_space<vmem>>, vector<1x4x256xf32>
    %7 = arith.subf %5, %6 : vector<1x4x256xf32>
    %8 = arith.mulf %7, %7 : vector<1x4x256xf32>
    %c0_7 = arith.constant 0 : index
    %c0_8 = arith.constant 0 : index
    %9 = vector.load %arg5[%c0_7, %c0_8] : memref<1x256xf32, #tpu.memory_space<vmem>>, vector<1x256xf32>
    %cst = arith.constant dense<0.000000e+00> : vector<1x256xf32>
    %10 = vector.multi_reduction <add>, %8, %cst [1] : vector<1x4x256xf32> to vector<1x256xf32>
    %11 = arith.addf %9, %10 : vector<1x256xf32>
    %c0_9 = arith.constant 0 : index
    %c0_10 = arith.constant 0 : index
    %12 = vector.load %arg5[%c0_9, %c0_10] : memref<1x256xf32, #tpu.memory_space<vmem>>, vector<1x256xf32>
    tpu.vector_store %arg5[%c0_9, %c0_10], %11 {strides = array<i32>} : memref<1x256xf32, #tpu.memory_space<vmem>>, vector<1x256xf32>,
    %c1_i32 = arith.constant 1 : i32
    %13 = arith.cmpi eq, %arg0, %c1_i32 : i32
    %c0_i32_11 = arith.constant 0 : i32
    %14 = arith.cmpi eq, %arg1, %c0_i32_11 : i32
    %15 = arith.andi %13, %14 : i1
    %16 = arith.extui %15 : i1 to i32
    %c0_i32_12 = arith.constant 0 : i32
    %17 = arith.cmpi ne, %16, %c0_i32_12 : i32
    scf.if %17 {
      %c0_13 = arith.constant 0 : index
      %c0_14 = arith.constant 0 : index
      %18 = vector.load %arg5[%c0_13, %c0_14] : memref<1x256xf32, #tpu.memory_space<vmem>>, vector<1x256xf32>
      %19 = vector.shape_cast %18 : vector<1x256xf32> to vector<1x1x256xf32>
      %cst_15 = arith.constant dense<0.000000e+00> : vector<1xf32>
      %20 = vector.multi_reduction <add>, %19, %cst_15 [1, 2] : vector<1x1x256xf32> to vector<1xf32>
      %21 = vector.shape_cast %20 : vector<1xf32> to vector<1x1x1xf32>
      %22 = vector.extract %21[0, 0, 0] : f32 from vector<1x1x1xf32>
      %cst_16 = arith.constant 4.8828125E-4 : f32
      %23 = arith.mulf %22, %cst_16 : f32
      %c0_17 = arith.constant 0 : index
      %c0_18 = arith.constant 0 : index
      %24 = memref.load %arg4[%c0_17, %c0_18] : memref<1x1xf32, #tpu.memory_space<smem>>
      memref.store %23, %arg4[%c0_17, %c0_18] : memref<1x1xf32, #tpu.memory_space<smem>>
    } else {
    }
    return
  }
  func.func @transform_0(%arg0: i32, %arg1: i32) -> (i32, i32, i32) {
    %c0_i32 = arith.constant 0 : i32
    %c0_i32_0 = arith.constant 0 : i32
    return %arg0, %c0_i32, %arg1 : i32, i32, i32
  }
  func.func @transform_1(%arg0: i32, %arg1: i32) -> (i32, i32, i32) {
    %c0_i32 = arith.constant 0 : i32
    %c0_i32_0 = arith.constant 0 : i32
    return %arg0, %c0_i32, %arg1 : i32, i32, i32
  }
  func.func @transform_2(%arg0: i32, %arg1: i32) -> (i32, i32) {
    %c0_i32 = arith.constant 0 : i32
    %c0_i32_0 = arith.constant 0 : i32
    %c0_i32_1 = arith.constant 0 : i32
    return %c0_i32, %c0_i32_0 : i32, i32
  }
}

</mosaic_0001>

<bundles_post_ra>
// kernel: tpu_custom_call.1
= control target key start
LH: loop header
LB: loop body
LE: loop exit
PB: predicated region body
PF: predicated region fallthrough
CT: control target
= control target key end

     0   :  { %7 = vsyncpa [#allocation4], 0  ;;  %s825_s0 = inlined_call_operand.hbm [shape: f32[2,4,256], index: 0, kind: input, shape index: {}]   ;;  %s826_s1 = inlined_call_operand.hbm [shape: f32[2,4,256], index: 1, kind: input, shape index: {}]   ;;  %s827_s2 = inlined_call_operand.hbm [shape: f32[1,1], index: 2, kind: output, shape index: {}]  }
   0x1   :  { %9 = vsyncpa [#allocation4 + $0x1], 0 }
   0x2   :  { %10 = vsyncpa [#allocation7], 0 }
   0x3   :  { %12 = vsyncpa [#allocation7 + $0x1], 0 }
   0x4   :  { %13 = vsyncpa [#allocation5], 0  ;;  %s638_s9 = smov 0   ;;  %s640_s10 = smov 0  }
   0x5   :  { %s642_s11 = smov 0   ;;  %s644_s12 = smov 0  }
   0x6   :  { %s646_s13 = smov 0   ;;  %s648_s14 = smov 0  }
   0x7 LB: > { %s393_s15 = sadd.s32 4294967295, %s616_s14   ;;  %s31_s16 = sadd.s32 1, %s612_s13  ;;  %s616_s14 = sphi %s648_s14, %s19_s14   ;;  %s612_s13 = sphi %s646_s13, %s841_s13   ;;  %s608_s12 = sphi %s644_s12, %s840_s12   ;;  %s604_s11 = sphi %s642_s11, %s839_s11   ;;  %s600_s10 = sphi %s640_s10, %s838_s10   ;;  %s596_s9 = sphi %s638_s9, %s837_s9  }
   0x8   : > { %p33_p0 = scmp.ge.s32.totalorder %s31_s16, 2  ;;  %s40_s17 = sadd.s32 1, %s604_s11 }
   0x9   : > { %p47_p1 = scmp.ne.s32.totalorder %s604_s11, %s600_s10  ;;  %p48_p2 = scmp.eq.s32.totalorder %s616_s14, 0 }
   0xa   : > { %s843_s16 = smov (%p33_p0, %s31_s16), 0  ;;  %p53_p4 = scmp.ne.s32.totalorder %s600_s10, %s596_s9 }
   0xb   : > { %p674_p3 = por %p48_p2, %p47_p1  ;;  %s35_s19 = ssub.s32 %s612_s13, %s843_s16 }
   0xc   : > { %p54_p5 = scmp.eq.s32.totalorder %s393_s15, 0  ;;  %p38_p6 = scmp.eq.s32.totalorder %s35_s19, 0 }
   0xd   : > { %p432_p8 = scmp.lt.s32.totalorder %s616_s14, 2  ;;  %s692_s22 = sand.u32 1, %s604_s11  }
   0xe   : > { %p683_p7 = por %p54_p5, %p53_p4  ;;  %s411_s23 = sshll.u32 %s612_s13, 7 }
   0xf   : > { %s689_s21 = scalar_select %p38_p6, %s604_s11, %s40_s17  }
  0x10   : > { %s830_s20 = scalar_select %p683_p7, 1, 0 }
  0x11   : > { %s396_s24 = sshll.u32 %s692_s22, 3  ;;  %s701_s27 = scalar_lea.hbm %s825_s0, %s411_s23 }
  0x12   : > { %s130_s28 = scalar_lea.vmem [#allocation3], %s396_s24  ;;  %p707_p9 = pnand %p432_p8, %p674_p3 }
  0x13   : > { %s140_s29 = sshll.u32 %s130_s28, 4  ;;  %s127_s3 = scalar_lea.sflag [#allocation4], %s692_s22  ;;  %s711_s29 = int_to_ptr.vmem [resolvable:$true] %s140_s29 }
  0x14   : > { %s486_s4 = scalar_lea.hbm %s701_s27, 128  ;;  %p488_p13 = pneg %p707_p9 }
  0x15   : > { %p487_p12 = scmp.ne.s32.totalorder %s701_s27, %s486_s4  ;;  %s491_s7 = scalar_lea.hbm %s825_s0, 256 }
  0x16   : > { %p492_p2 = scmp.lt.u32.totalorder %s701_s27, %s825_s0  ;;  %p493_p3 = scmp.lt.u32.totalorder %s491_s7, %s486_s4 }
  0x17   : > { %p489_p0 = pnand %p488_p13, %p487_p12  ;;  %p495_p5 = scmp.lt.u32.totalorder %s486_s4, %s701_s27 }
  0x18   : > { %p494_p4 = por %p493_p3, %p492_p2 }
  0x19   : > { %p490_p1 = pneg %p489_p0 }
  0x1a   : > { %p496_p6 = por %p495_p5, %p494_p4 }
  0x1c   : > { %p497_p8 = pnand %p496_p6, %p490_p1 }
  0x1e   : > { %500 = shalt.err (!%p497_p8)
}
  0x1f   : > { %s501_s17 = scalar_lea.vmem %s711_s29, 128  ;;  %s618_s18 = smov [#allocation3]  }
  0x20   : > { %p502_p12 = scmp.ne.s32.totalorder %s711_s29, %s501_s17  ;;  %s506_s19 = sshll.u32 %s618_s18, 4  ;;  %s507_s19 = int_to_ptr.vmem [resolvable:$false] %s506_s19 }
  0x21   : > { %s508_s25 = scalar_lea.vmem %s507_s19, 256  ;;  %p509_p11 = scmp.lt.s32.totalorder %s711_s29, %s507_s19 }
  0x22   : > { %p504_p0 = pnand %p502_p12, %p488_p13  ;;  %p510_p2 = scmp.lt.s32.totalorder %s508_s25, %s501_s17 }
  0x24   : > { %p505_p10 = pneg %p504_p0  ;;  %p511_p3 = por %p510_p2, %p509_p11 }
  0x26   : > { %p512_p4 = pnand %p511_p3, %p505_p10 }
  0x28   : > { %515 = shalt.err (!%p512_p4)
}
  0x29   : > { %428 = dma.hbm_to_vmem [thread:$0]  (!%p707_p9), %s701_s27, 128, %s711_s29, %s127_s3  }
  0x2a   : > { %p832_p1 = scmp.lt.s32.totalorder %s616_s14, 3  ;;  %p833_p5 = scmp.ge.s32.totalorder %s616_s14, 1 }
  0x2b   : > { %s754_s5 = scalar_lea.hbm %s826_s1, %s411_s23  ;;  %s151_s6 = scalar_lea.vmem [#allocation6], %s396_s24 }
  0x2c   : > { %p745_p6 = pnand %p833_p5, %p832_p1  ;;  %s161_s7 = sshll.u32 %s151_s6, 4  ;;  %s162_s7 = int_to_ptr.vmem [resolvable:$true] %s161_s7 }
  0x2d   : > { %s148_s27 = scalar_lea.sflag [#allocation7], %s692_s22  ;;  %s516_s29 = scalar_lea.hbm %s754_s5, 128 }
  0x2e   : > { %s834_s26 = scalar_select %p745_p6, 1, 0 }
  0x2f   : > { %p517_p10 = scmp.ne.s32.totalorder %s754_s5, %s516_s29  ;;  %s521_s23 = scalar_lea.hbm %s826_s1, 256 }
  0x30   : > { %p522_p12 = scmp.lt.u32.totalorder %s754_s5, %s826_s1  ;;  %p523_p0 = scmp.lt.u32.totalorder %s521_s23, %s516_s29 }
  0x31   : > { %p519_p11 = pnand %p517_p10, %p488_p13  ;;  %p525_p3 = scmp.lt.u32.totalorder %s516_s29, %s754_s5 }
  0x32   : > { %p524_p2 = por %p523_p0, %p522_p12 }
  0x33   : > { %p520_p8 = pneg %p519_p11 }
  0x34   : > { %p526_p4 = por %p525_p3, %p524_p2 }
  0x36   : > { %p527_p1 = pnand %p526_p4, %p520_p8 }
  0x38   : > { %530 = shalt.err (!%p527_p1)
}
  0x39   : > { %s531_s22 = scalar_lea.vmem %s162_s7, 128  ;;  %s619_s24 = smov [#allocation6]  }
  0x3a   : > { %p532_p5 = scmp.ne.s32.totalorder %s162_s7, %s531_s22  ;;  %s536_s18 = sshll.u32 %s619_s24, 4  ;;  %s537_s18 = int_to_ptr.vmem [resolvable:$false] %s536_s18 }
  0x3b   : > { %s538_s19 = scalar_lea.vmem %s537_s18, 256  ;;  %p539_p7 = scmp.lt.s32.totalorder %s162_s7, %s537_s18 }
  0x3c   : > { %p534_p10 = pnand %p532_p5, %p488_p13  ;;  %p540_p6 = scmp.lt.s32.totalorder %s538_s19, %s531_s22 }
  0x3e   : > { %p535_p11 = pneg %p534_p10  ;;  %p541_p0 = por %p540_p6, %p539_p7 }
  0x40   : > { %p542_p12 = pnand %p541_p0, %p535_p11 }
  0x42   : > { %545 = shalt.err (!%p542_p12)
}
  0x43   : > { %431 = dma.hbm_to_vmem [thread:$0]  (!%p707_p9), %s754_s5, 128, %s162_s7, %s148_s27  }
  0x44   : > { %p835_p8 = scmp.ne.s32.totalorder %s834_s26, 0 }
  0x45   : > { %s172_s25 = sand.u32 (!%p835_p8), 1, %s600_s10   ;;  %p836_p13 = scmp.ne.s32.totalorder (!%p835_p8), %s830_s20, 0 }
  0x46   : > { %170 = sbr.rel (%p835_p8) target bundleno = 352 (0x160), region = 28  ;;  %s403_s28 = sshll.u32 (!%p835_p8), %s172_s25, 3 }
  0x47   : > { %s173_s4 = scalar_lea.sflag (!%p835_p8), [#allocation4], %s172_s25  ;;  %s176_s6 = scalar_lea.vmem (!%p835_p8), [#allocation3], %s403_s28 }
  0x4d   : > { %583 = dma.done.wait (%p836_p13), %s173_s4, 128  }
  0x4e   : > { %585 = vsyncadd (%p836_p13), %s173_s4, 4294967168  ;;  %s182_s29 = scalar_lea.sflag [#allocation7], %s172_s25  ;;  %s185_s3 = scalar_lea.vmem [#allocation6], %s403_s28 }
  0x4f   : > { %587 = dma.done.wait (%p836_p13), %s182_s29, 128  }
  0x50   : > { %589 = vsyncadd (%p836_p13), %s182_s29, 4294967168  ;;  %p208_p7 = scmp.eq.s32.totalorder %s608_s12, 0 }
  0x51   : > { %v214_v0 = vlaneseq (%p208_p7)  ;;  %v620_v1 = vmov (%p208_p7), 0.0  }
  0x52   : > { %213 = sbr.rel (!%p208_p7) target bundleno = 89 (0x59), region = 40 }
  0x53   : > { %vm216_vm0 = vcmp.lt.s32.totalorder (%p208_p7), %v214_v0, 256 }
  0x54   : > { %218 = vst.msk [vmem:[#allocation2] sm:$0x3] (%p208_p7), %vm216_vm0, %v620_v1 }
  0x59 PF: > { %v219_v2 = vld [vmem:[%s176_s6] sm:$0xff]  ;;  %v220_v3 = vld [vmem:[%s185_s3] sm:$0xff]  ;;  %p266_p9 = scmp.eq.s32.totalorder %s608_s12, 1  ;;  %vm227_vm1 = vcmask 1043456   ;;  %v621_v14 = vmov 1966171168   ;;  %v248_v16 = vlaneseq }
  0x5a   : > { %v221_v4 = vsub.f32 %v219_v2, %v220_v3  ;;  %v246_v15 = vunpack.c.l.s4 %v621_v14  ;;  %vm283_vm3 = vcmask (%p266_p9), 1040384  }
  0x5b   : > { %v249_v22 = vshrl.u32 %v248_v16, 7  ;;  %v223_v29 = vld [vmem:[#allocation2] sm:$0x3]  ;;  %vm263_vm2 = vcmp.lt.s32.totalorder %v248_v16, 256 }
  0x5c   : > { %v222_v5 = vmul.f32 %v221_v4, %v221_v4  ;;  %v247_v21 = vunpack.c.0.s8 %v246_v15 }
  0x5d   : > { %v275_v33 = vsub.s32 (%p266_p9), 0, %v249_v22  ;;  %v279_v34 = vsub.s32 (%p266_p9), 1, %v249_v22 }
  0x5e   : > { %v225_v6 = vcombine.high %v222_v5, %v222_v5  ;;  %v228_v7 = vsel %vm227_vm1, %v222_v5, 0.0  ;;  %v250_v26 = vsub.s32 %v247_v21, %v249_v22 }
  0x5f   : > { %v229_v8 = vrot.slane %v228_v7, 4 }
  0x60   : > { %v235_v9 = vsel %vm227_vm1, %v225_v6, 0.0 }
  0x61   : > { %v230_v10 = vadd.f32 %v229_v8, %v228_v7  ;;  %v236_v11 = vrot.slane %v235_v9, 4 }
  0x63   : > { %v231_v12 = vrot.slane %v230_v10, 2  ;;  %v237_v13 = vadd.f32 %v236_v11, %v235_v9 }
  0x65   : > { %v232_v17 = vadd.f32 %v231_v12, %v230_v10  ;;  %v238_v18 = vrot.slane %v237_v13, 2 }
  0x67   : > { %v233_v19 = vrot.slane %v232_v17, 1  ;;  %v239_v20 = vadd.f32 %v238_v18, %v237_v13 }
  0x69   : > { %v234_v23 = vadd.f32 %v233_v19, %v232_v17  ;;  %v240_v24 = vrot.slane %v239_v20, 1 }
  0x6b   : > { %v241_v25 = vadd.f32 %v240_v24, %v239_v20 }
  0x6d   : > { %v244_v27 = vcombine.low %v234_v23, %v241_v25 }
  0x6f   : > { %v251_v28 = vrot.slane %v244_v27, %v250_v26  ;;  %270 = sbr.rel (!%p266_p9) target bundleno = 337 (0x151), region = 44 }
  0x71   : > { %v258_v30 = vrot.slane %v251_v28, %v250_v26 }
  0x73   : > { %v260_v31 = vadd.f32 %v258_v30, %v223_v29 }
  0x75   : > { %265 = vst.msk [vmem:[#allocation2] sm:$0x3] %vm263_vm2, %v260_v31 }
  0x7c   : > { %v271_v32 = vld [vmem:[#allocation2] sm:$0x3] }
  0x7d   : > { %v276_v35 = vrot.slane %v271_v32, %v275_v33  ;;  %v280_v36 = vrot.slane %v271_v32, %v279_v34 }
  0x7f   : > { %v284_v37 = vsel %vm283_vm3, %v276_v35, 0.0  ;;  %v285_v38 = vsel %vm283_vm3, %v280_v36, 0.0 }
  0x80   : > { %v286_v39 = vadd.f32 %v285_v38, %v284_v37 }
  0x82   : > { %287 = vadd.xlane.f32.xlu0 %v286_v39 }
 0x10f   : > { %v288_v40 = vpop.xlane.xlu0 %287 }
 0x110   : > { %v289_v41 = vrot.slane %v288_v40, 4 }
 0x112   : > { %v290_v42 = vadd.f32 %v289_v41, %v288_v40 }
 0x114   : > { %v291_v43 = vrot.slane %v290_v42, 2 }
 0x116   : > { %v292_v44 = vadd.f32 %v291_v43, %v290_v42 }
 0x118   : > { %v293_v45 = vrot.slane %v292_v44, 1 }
 0x11a   : > { %v294_v46 = vadd.f32 %v293_v45, %v292_v44 }
 0x11c   : > { %415 = vpush %v294_v46 }
 0x14d   : > { %s416_s12 = spop %415 }
 0x14e   : > { %s296_s20 = smul.f32 0.00048828125, %s416_s12 }
 0x150   : > { %298 = sst [smem:[#allocation8]] %s296_s20 }
 0x151 PF: > { %p433_p6 = scmp.eq.s32.totalorder %s393_s15, 1  ;;  %s546_s5 = scalar_lea.hbm %s827_s2, 16 }
 0x152   : > { %p547_p2 = scmp.ne.s32.totalorder %s827_s2, %s546_s5  ;;  %p552_p1 = scmp.lt.u32.totalorder %s546_s5, %s827_s2 }
 0x154   : > { %p548_p3 = pnand %p547_p2, %p433_p6 }
 0x156   : > { %p549_p4 = pneg %p548_p3 }
 0x158   : > { %p554_p5 = pnand %p552_p1, %p549_p4 }
 0x15a   : > { %557 = shalt.err (!%p554_p5)
}
 0x15b   : > { %s622_s9 = smov [#allocation8]  }
 0x15c   : > { %422 = dma.smem_to_hbm (%p433_p6), %s622_s9, 16, %s827_s2, [#allocation5]  }
 0x15d   : > { %591 = dma.done.wait (%p433_p6), [#allocation5], 16  }
 0x15e   : > { %593 = vsyncadd (%p433_p6), [#allocation5], 4294967280 }
 0x15f   : > { %312 = sfence }
 0x160 PF: > { %s19_s14 = sadd.s32 1, %s616_s14   ;;  %s837_s9 = smov %s600_s10 }
 0x161   : > { %p16_p10 = scmp.ge.s32.totalorder %s19_s14, 4   ;;  %s838_s10 = smov %s604_s11 }
 0x162   : > { %s839_s11 = smov %s689_s21  ;;  %s840_s12 = smov %s612_s13 }
 0x163   : > { %s841_s13 = smov %s843_s16  ;;  %18 = sbr.rel (!%p16_p10) target bundleno = 7 (0x7), region = 87 }
 0x16a   :  { %318 = vsyncpa [#allocation4], 1 }
 0x16b   :  { %320 = vsyncpa [#allocation4 + $0x1], 1 }
 0x16c   :  { %321 = vsyncpa [#allocation7], 1 }
 0x16d   :  { %323 = vsyncpa [#allocation7 + $0x1], 1 }
 0x16e   :  { %324 = vsyncpa [#allocation5], 1 }
 0x16f   :  { %326 = vsyncpa [#allocation5 + $0x1], 1 }

</bundles_post_ra>
